<compile_context>
chip_gen: v6e
topology: v6e:2x2x1
jax: 0.10.0
libtpu: 0.0.40
codegen_flags: <defaults>
</compile_context>

<pallas_src>
import jax
import jax.numpy as jnp
from jax.experimental import pallas as pl
from jax.experimental.pallas import tpu as pltpu

I_SIZE = 8        # per-timestep input features
SEQ_LEN = 8       # sequence length (== i_size in the module)
HIDDEN = 16
NUM_CLASS = 10
NUM_LAYERS = 2    # hard-wired in the kernel (wavefront over the two stacked cells)


def lstm_kernel(x_ref, wx_ref, wrec_ref, b_ref, wcls_ref, bcls_ref, out_ref):
    """Wavefront-fused 2-layer LSTM over time + classifier, all in VMEM.

    x_ref    : (T*B, I)  f32, time-major rows (row = t*B + b)
    wx_ref   : (I, 8H)   layer-0 input weights, interleaved gate layout,
                         layer-1 columns are zero
    wrec_ref : (2H, 8H)  rows 0..H-1 (h0) -> [whh0 | wih1],
                         rows H..2H-1 (h1) -> [  0  | whh1]
    b_ref    : (1, 8H)   [b0 | b1] interleaved (bias_ih + bias_hh per layer)
    wcls_ref : (2H, C)   rows 0..H-1 zero, rows H..2H-1 = classifier weight
    bcls_ref : (1, C)
    out_ref  : (B, C)

    Gate lane layout (8H = 128 lanes): [i0 i1 | f0 f1 | g0 g1 | o0 o1],
    16 lanes each, so every 2H-wide gate chunk lines up with the packed
    state [layer0 | layer1].
    """
    H = HIDDEN
    T = SEQ_LEN
    x_tb = x_ref[...]                       # (T*B, I)
    B = x_tb.shape[0] // T

    wrec = wrec_ref[...]                    # (2H, 8H)
    b = b_ref[...]                          # (1, 8H)

    # Hoisted layer-0 input projection: ONE matmul for all T timesteps.
    # (layer-1 columns of wx are zero, so xg's layer-1 lanes are exactly 0.)
    xg = jnp.dot(x_tb, wx_ref[...], preferred_element_type=jnp.float32)  # (T*B, 8H)

    # Lane masks, hoisted out of the loop (broadcasts are not CSE'd by JAX).
    lane = jax.lax.broadcasted_iota(jnp.int32, (B, 8 * H), 1)
    g_lane = (lane >= 4 * H) & (lane < 6 * H)        # cell-candidate (tanh) lanes
    s_lane = jax.lax.broadcasted_iota(jnp.int32, (B, 2 * H), 1)
    l0_lane = s_lane < H                             # layer-0 half of the state

    h_pk = jnp.zeros((B, 2 * H), jnp.float32)        # [h0 | h1]
    c_pk = jnp.zeros((B, 2 * H), jnp.float32)        # [c0 | c1]

    # Wavefront over T+1 steps: step s advances layer0 to t=s and layer1 to
    # t=s-1 with a single (B,2H) x (2H,8H) matmul.  T is small & static, so
    # the loop is unrolled for full LLO scheduler visibility.
    for s in range(T + 1):
        gates = jnp.dot(h_pk, wrec, preferred_element_type=jnp.float32) + b
        if s < T:
            gates = gates + xg[s * B:(s + 1) * B, :]     # layer-0 input term
        # Whole-vreg activations: one sigmoid + one tanh over all 128 lanes,
        # tanh selected for the g-gate lanes via the lane mask.
        act = jnp.where(g_lane, jnp.tanh(gates), jax.nn.sigmoid(gates))
        i_g = act[:, 0 * 2 * H:1 * 2 * H]
        f_g = act[:, 1 * 2 * H:2 * 2 * H]
        g_g = act[:, 2 * 2 * H:3 * 2 * H]
        o_g = act[:, 3 * 2 * H:4 * 2 * H]
        c_new = f_g * c_pk + i_g * g_g
        h_new = o_g * jnp.tanh(c_new)
        if s == 0:
            # Layer 1 has no valid input yet: keep its half of the state at 0.
            c_pk = jnp.where(l0_lane, c_new, c_pk)
            h_pk = jnp.where(l0_lane, h_new, h_pk)
        else:
            # At s == T the layer-0 half is a phantom step; it stays finite
            # and is never read again (classifier rows for it are zero).
            c_pk = c_new
            h_pk = h_new

    # Fused classifier on the final layer-1 hidden state.  Rows for the
    # layer-0 half of h_pk are zero, so no slice is needed.
    logits = (jnp.dot(h_pk, wcls_ref[...], preferred_element_type=jnp.float32)
              + bcls_ref[...])
    out_ref[...] = logits.astype(out_ref.dtype)


def init_params(key):
    """Deterministic params matching PyTorch nn.LSTM / nn.Linear shapes & init range."""
    ks = jax.random.split(key, 10)
    H, I = HIDDEN, I_SIZE
    bound = 1.0 / jnp.sqrt(jnp.float32(H))

    def u(k, shape):
        return jax.random.uniform(k, shape, jnp.float32, -bound, bound)

    return {
        # layer 0
        "weight_ih_l0": u(ks[0], (4 * H, I)),
        "weight_hh_l0": u(ks[1], (4 * H, H)),
        "bias_ih_l0":   u(ks[2], (4 * H,)),
        "bias_hh_l0":   u(ks[3], (4 * H,)),
        # layer 1
        "weight_ih_l1": u(ks[4], (4 * H, H)),
        "weight_hh_l1": u(ks[5], (4 * H, H)),
        "bias_ih_l1":   u(ks[6], (4 * H,)),
        "bias_hh_l1":   u(ks[7], (4 * H,)),
        # classifier
        "cls_w": u(ks[8], (NUM_CLASS, H)),
        "cls_b": u(ks[9], (NUM_CLASS,)),
    }


def _interleave_gates(w_l0, w_l1):
    """(in, 4H) x 2 in PyTorch gate order [i,f,g,o] -> (in, 8H) laid out as
    [i0,i1,f0,f1,g0,g1,o0,o1] (16 lanes per chunk)."""
    H = HIDDEN
    chunks = []
    for k in range(4):
        chunks.append(w_l0[:, k * H:(k + 1) * H])
        chunks.append(w_l1[:, k * H:(k + 1) * H])
    return jnp.concatenate(chunks, axis=-1)


def _pack_params(params):
    """One-time weight packing (layout plumbing only, outside the kernel)."""
    H, I, C = HIDDEN, I_SIZE, NUM_CLASS
    f32 = jnp.float32
    wih0 = params["weight_ih_l0"].T.astype(f32)   # (I, 4H)
    whh0 = params["weight_hh_l0"].T.astype(f32)   # (H, 4H)
    wih1 = params["weight_ih_l1"].T.astype(f32)   # (H, 4H)
    whh1 = params["weight_hh_l1"].T.astype(f32)   # (H, 4H)
    b0 = (params["bias_ih_l0"] + params["bias_hh_l0"]).reshape(1, 4 * H).astype(f32)
    b1 = (params["bias_ih_l1"] + params["bias_hh_l1"]).reshape(1, 4 * H).astype(f32)

    w_x = _interleave_gates(wih0, jnp.zeros((I, 4 * H), f32))            # (I, 8H)
    w_rec = jnp.concatenate(
        [_interleave_gates(whh0, wih1),                                   # h0 rows
         _interleave_gates(jnp.zeros((H, 4 * H), f32), whh1)],            # h1 rows
        axis=0)                                                           # (2H, 8H)
    b_all = _interleave_gates(b0, b1)                                     # (1, 8H)
    w_cls = jnp.concatenate(
        [jnp.zeros((H, C), f32), params["cls_w"].T.astype(f32)], axis=0)  # (2H, C)
    b_cls = params["cls_b"].reshape(1, C).astype(f32)
    return w_x, w_rec, b_all, w_cls, b_cls


def lstm_forward(input_data, params):
    """Matches LSTM.forward: view -> 2-layer LSTM -> last timestep -> Linear."""
    B = input_data.shape[0]
    T, I = SEQ_LEN, I_SIZE
    # view(B, T, I) as in the module, then time-major (T*B, I) so the hoisted
    # input projection is one lane-dense matmul and each step's rows are a
    # contiguous sublane slice.
    x = input_data.reshape(B, T, I).astype(jnp.float32)
    x_tb = jnp.transpose(x, (1, 0, 2)).reshape(T * B, I)

    w_x, w_rec, b_all, w_cls, b_cls = _pack_params(params)

    vmem = pl.BlockSpec(memory_space=pltpu.MemorySpace.VMEM)
    # Single-program call: total VMEM footprint is a few KiB on every TPU
    # generation (v5e/v6e/v7x).  When the batch grows, add a grid over B with
    # dimension_semantics=("parallel",) and a (tile_B, ...) BlockSpec on x/out,
    # keeping the weights as untiled resident inputs.
    return pl.pallas_call(
        lstm_kernel,
        out_shape=jax.ShapeDtypeStruct((B, NUM_CLASS), jnp.float32),
        in_specs=[vmem] * 6,
        out_specs=vmem,
    )(x_tb, w_x, w_rec, b_all, w_cls, b_cls)


def lstm_reference(input_data, params):
    """Pure-JAX reference (direct PyTorch semantics) for sanity checking."""
    B = input_data.shape[0]
    x = input_data.reshape(B, SEQ_LEN, I_SIZE).astype(jnp.float32)
    H = HIDDEN
    hi = jax.lax.Precision.HIGHEST

    def cell(x_t, h, c, wih, whh, b_ih, b_hh):
        gates = (jnp.dot(x_t, wih.T, precision=hi)
                 + jnp.dot(h, whh.T, precision=hi) + b_ih + b_hh)
        i_g = jax.nn.sigmoid(gates[:, 0 * H:1 * H])
        f_g = jax.nn.sigmoid(gates[:, 1 * H:2 * H])
        g_g = jnp.tanh(gates[:, 2 * H:3 * H])
        o_g = jax.nn.sigmoid(gates[:, 3 * H:4 * H])
        c_new = f_g * c + i_g * g_g
        return o_g * jnp.tanh(c_new), c_new

    h0 = jnp.zeros((B, H)); c0 = jnp.zeros((B, H))
    h1 = jnp.zeros((B, H)); c1 = jnp.zeros((B, H))
    for t in range(SEQ_LEN):
        h0, c0 = cell(x[:, t, :], h0, c0, params["weight_ih_l0"],
                      params["weight_hh_l0"], params["bias_ih_l0"], params["bias_hh_l0"])
        h1, c1 = cell(h0, h1, c1, params["weight_ih_l1"],
                      params["weight_hh_l1"], params["bias_ih_l1"], params["bias_hh_l1"])
    return jnp.dot(h1, params["cls_w"].T, precision=hi) + params["cls_b"]


if __name__ == "__main__":
    key = jax.random.PRNGKey(0)
    k_param, k_data = jax.random.split(key)
    params = init_params(k_param)

    # NCHW-style input consistent with input_size=(8, 8, 1): (B=2, C=1, H=8, W=8)
    x = jax.random.normal(k_data, (2, 1, I_SIZE, I_SIZE), jnp.float32)

    out = lstm_forward(x, params)
    out = jax.block_until_ready(out)

    ref = lstm_reference(x, params)
    assert out.shape == (2, NUM_CLASS)
    # 1e-3 tolerance: allows for MXU default-precision f32 matmul rounding while
    # still catching any wiring/semantics bug (those show up at >1e-2).
    assert jnp.allclose(out, ref, atol=1e-3, rtol=1e-3), "mismatch vs JAX reference"

    print("KERNEL_OK")
</pallas_src>

<mosaic_0001>
module attributes {stable_mosaic.version = 11 : i64} {
  func.func @lstm_kernel(%arg0: memref<16x8xf32, #tpu.memory_space<vmem>>, %arg1: memref<8x128xf32, #tpu.memory_space<vmem>>, %arg2: memref<32x128xf32, #tpu.memory_space<vmem>>, %arg3: memref<1x128xf32, #tpu.memory_space<vmem>>, %arg4: memref<32x10xf32, #tpu.memory_space<vmem>>, %arg5: memref<1x10xf32, #tpu.memory_space<vmem>>, %arg6: memref<2x10xf32, #tpu.memory_space<vmem>>) attributes {dimension_semantics = [], scalar_prefetch = 0 : i64, scratch_operands = 0 : i64, tpu.core_type = #tpu.core_type<tc>} {
    %c0 = arith.constant 0 : index
    %c0_0 = arith.constant 0 : index
    %0 = vector.load %arg0[%c0, %c0_0] : memref<16x8xf32, #tpu.memory_space<vmem>>, vector<16x8xf32>
    %c0_1 = arith.constant 0 : index
    %c0_2 = arith.constant 0 : index
    %1 = vector.load %arg2[%c0_1, %c0_2] : memref<32x128xf32, #tpu.memory_space<vmem>>, vector<32x128xf32>
    %c0_3 = arith.constant 0 : index
    %c0_4 = arith.constant 0 : index
    %2 = vector.load %arg3[%c0_3, %c0_4] : memref<1x128xf32, #tpu.memory_space<vmem>>, vector<1x128xf32>
    %c0_5 = arith.constant 0 : index
    %c0_6 = arith.constant 0 : index
    %3 = vector.load %arg1[%c0_5, %c0_6] : memref<8x128xf32, #tpu.memory_space<vmem>>, vector<8x128xf32>
    %cst = arith.constant dense<0.000000e+00> : vector<16x128xf32>
    %4 = tpu.matmul %0, %3, %cst {dimension_numbers = #tpu.dot_dimension_numbers<[1], [0], [0], [1], [0, 0, 1, 1], [], []>} : vector<16x8xf32>, vector<8x128xf32>, vector<16x128xf32> -> vector<16x128xf32>
    %5 = tpu.iota {dimensions = array<i32: 1>} : vector<2x128xi32>
    %c64_i32 = arith.constant 64 : i32
    %6 = vector.broadcast %c64_i32 : i32 to vector<2x128xi32>
    %7 = arith.cmpi sge, %5, %6 : vector<2x128xi32>
    %c96_i32 = arith.constant 96 : i32
    %8 = vector.broadcast %c96_i32 : i32 to vector<2x128xi32>
    %9 = arith.cmpi slt, %5, %8 : vector<2x128xi32>
    %10 = arith.andi %7, %9 : vector<2x128xi1>
    %11 = tpu.iota {dimensions = array<i32: 1>} : vector<2x32xi32>
    %c16_i32 = arith.constant 16 : i32
    %12 = vector.broadcast %c16_i32 : i32 to vector<2x32xi32>
    %13 = arith.cmpi slt, %11, %12 : vector<2x32xi32>
    %cst_7 = arith.constant 0.000000e+00 : f32
    %14 = vector.broadcast %cst_7 : f32 to vector<2x32xf32>
    %cst_8 = arith.constant 0.000000e+00 : f32
    %15 = vector.broadcast %cst_8 : f32 to vector<2x32xf32>
    %cst_9 = arith.constant dense<0.000000e+00> : vector<2x128xf32>
    %16 = tpu.matmul %14, %1, %cst_9 {dimension_numbers = #tpu.dot_dimension_numbers<[1], [0], [0], [1], [0, 0, 1, 1], [], []>} : vector<2x32xf32>, vector<32x128xf32>, vector<2x128xf32> -> vector<2x128xf32>
    %17 = vector.broadcast %2 : vector<1x128xf32> to vector<2x128xf32>
    %18 = arith.addf %16, %17 : vector<2x128xf32>
    %19 = vector.extract_strided_slice %4 {offsets = [0, 0], sizes = [2, 128], strides = [1, 1]} : vector<16x128xf32> to vector<2x128xf32>
    %20 = arith.addf %18, %19 : vector<2x128xf32>
    %21 = math.tanh %20 : vector<2x128xf32>
    %22 = arith.negf %20 : vector<2x128xf32>
    %23 = math.exp %22 : vector<2x128xf32>
    %cst_10 = arith.constant 1.000000e+00 : f32
    %24 = vector.broadcast %cst_10 : f32 to vector<2x128xf32>
    %25 = arith.addf %24, %23 : vector<2x128xf32>
    %26 = arith.divf %24, %25 : vector<2x128xf32>
    %27 = arith.select %10, %21, %26 : vector<2x128xi1>, vector<2x128xf32>
    %28 = vector.extract_strided_slice %27 {offsets = [0, 0], sizes = [2, 32], strides = [1, 1]} : vector<2x128xf32> to vector<2x32xf32>
    %29 = vector.extract_strided_slice %27 {offsets = [0, 32], sizes = [2, 32], strides = [1, 1]} : vector<2x128xf32> to vector<2x32xf32>
    %30 = vector.extract_strided_slice %27 {offsets = [0, 64], sizes = [2, 32], strides = [1, 1]} : vector<2x128xf32> to vector<2x32xf32>
    %31 = vector.extract_strided_slice %27 {offsets = [0, 96], sizes = [2, 32], strides = [1, 1]} : vector<2x128xf32> to vector<2x32xf32>
    %32 = arith.mulf %29, %15 : vector<2x32xf32>
    %33 = arith.mulf %28, %30 : vector<2x32xf32>
    %34 = arith.addf %32, %33 : vector<2x32xf32>
    %35 = math.tanh %34 : vector<2x32xf32>
    %36 = arith.mulf %31, %35 : vector<2x32xf32>
    %37 = arith.select %13, %34, %15 : vector<2x32xi1>, vector<2x32xf32>
    %38 = arith.select %13, %36, %14 : vector<2x32xi1>, vector<2x32xf32>
    %cst_11 = arith.constant dense<0.000000e+00> : vector<2x128xf32>
    %39 = tpu.matmul %38, %1, %cst_11 {dimension_numbers = #tpu.dot_dimension_numbers<[1], [0], [0], [1], [0, 0, 1, 1], [], []>} : vector<2x32xf32>, vector<32x128xf32>, vector<2x128xf32> -> vector<2x128xf32>
    %40 = vector.broadcast %2 : vector<1x128xf32> to vector<2x128xf32>
    %41 = arith.addf %39, %40 : vector<2x128xf32>
    %42 = vector.extract_strided_slice %4 {offsets = [2, 0], sizes = [2, 128], strides = [1, 1]} : vector<16x128xf32> to vector<2x128xf32>
    %43 = arith.addf %41, %42 : vector<2x128xf32>
    %44 = math.tanh %43 : vector<2x128xf32>
    %45 = arith.negf %43 : vector<2x128xf32>
    %46 = math.exp %45 : vector<2x128xf32>
    %cst_12 = arith.constant 1.000000e+00 : f32
    %47 = vector.broadcast %cst_12 : f32 to vector<2x128xf32>
    %48 = arith.addf %47, %46 : vector<2x128xf32>
    %49 = arith.divf %47, %48 : vector<2x128xf32>
    %50 = arith.select %10, %44, %49 : vector<2x128xi1>, vector<2x128xf32>
    %51 = vector.extract_strided_slice %50 {offsets = [0, 0], sizes = [2, 32], strides = [1, 1]} : vector<2x128xf32> to vector<2x32xf32>
    %52 = vector.extract_strided_slice %50 {offsets = [0, 32], sizes = [2, 32], strides = [1, 1]} : vector<2x128xf32> to vector<2x32xf32>
    %53 = vector.extract_strided_slice %50 {offsets = [0, 64], sizes = [2, 32], strides = [1, 1]} : vector<2x128xf32> to vector<2x32xf32>
    %54 = vector.extract_strided_slice %50 {offsets = [0, 96], sizes = [2, 32], strides = [1, 1]} : vector<2x128xf32> to vector<2x32xf32>
    %55 = arith.mulf %52, %37 : vector<2x32xf32>
    %56 = arith.mulf %51, %53 : vector<2x32xf32>
    %57 = arith.addf %55, %56 : vector<2x32xf32>
    %58 = math.tanh %57 : vector<2x32xf32>
    %59 = arith.mulf %54, %58 : vector<2x32xf32>
    %cst_13 = arith.constant dense<0.000000e+00> : vector<2x128xf32>
    %60 = tpu.matmul %59, %1, %cst_13 {dimension_numbers = #tpu.dot_dimension_numbers<[1], [0], [0], [1], [0, 0, 1, 1], [], []>} : vector<2x32xf32>, vector<32x128xf32>, vector<2x128xf32> -> vector<2x128xf32>
    %61 = vector.broadcast %2 : vector<1x128xf32> to vector<2x128xf32>
    %62 = arith.addf %60, %61 : vector<2x128xf32>
    %63 = vector.extract_strided_slice %4 {offsets = [4, 0], sizes = [2, 128], strides = [1, 1]} : vector<16x128xf32> to vector<2x128xf32>
    %64 = arith.addf %62, %63 : vector<2x128xf32>
    %65 = math.tanh %64 : vector<2x128xf32>
    %66 = arith.negf %64 : vector<2x128xf32>
    %67 = math.exp %66 : vector<2x128xf32>
    %cst_14 = arith.constant 1.000000e+00 : f32
    %68 = vector.broadcast %cst_14 : f32 to vector<2x128xf32>
    %69 = arith.addf %68, %67 : vector<2x128xf32>
    %70 = arith.divf %68, %69 : vector<2x128xf32>
    %71 = arith.select %10, %65, %70 : vector<2x128xi1>, vector<2x128xf32>
    %72 = vector.extract_strided_slice %71 {offsets = [0, 0], sizes = [2, 32], strides = [1, 1]} : vector<2x128xf32> to vector<2x32xf32>
    %73 = vector.extract_strided_slice %71 {offsets = [0, 32], sizes = [2, 32], strides = [1, 1]} : vector<2x128xf32> to vector<2x32xf32>
    %74 = vector.extract_strided_slice %71 {offsets = [0, 64], sizes = [2, 32], strides = [1, 1]} : vector<2x128xf32> to vector<2x32xf32>
    %75 = vector.extract_strided_slice %71 {offsets = [0, 96], sizes = [2, 32], strides = [1, 1]} : vector<2x128xf32> to vector<2x32xf32>
    %76 = arith.mulf %73, %57 : vector<2x32xf32>
    %77 = arith.mulf %72, %74 : vector<2x32xf32>
    %78 = arith.addf %76, %77 : vector<2x32xf32>
    %79 = math.tanh %78 : vector<2x32xf32>
    %80 = arith.mulf %75, %79 : vector<2x32xf32>
    %cst_15 = arith.constant dense<0.000000e+00> : vector<2x128xf32>
    %81 = tpu.matmul %80, %1, %cst_15 {dimension_numbers = #tpu.dot_dimension_numbers<[1], [0], [0], [1], [0, 0, 1, 1], [], []>} : vector<2x32xf32>, vector<32x128xf32>, vector<2x128xf32> -> vector<2x128xf32>
    %82 = vector.broadcast %2 : vector<1x128xf32> to vector<2x128xf32>
    %83 = arith.addf %81, %82 : vector<2x128xf32>
    %84 = vector.extract_strided_slice %4 {offsets = [6, 0], sizes = [2, 128], strides = [1, 1]} : vector<16x128xf32> to vector<2x128xf32>
    %85 = arith.addf %83, %84 : vector<2x128xf32>
    %86 = math.tanh %85 : vector<2x128xf32>
    %87 = arith.negf %85 : vector<2x128xf32>
    %88 = math.exp %87 : vector<2x128xf32>
    %cst_16 = arith.constant 1.000000e+00 : f32
    %89 = vector.broadcast %cst_16 : f32 to vector<2x128xf32>
    %90 = arith.addf %89, %88 : vector<2x128xf32>
    %91 = arith.divf %89, %90 : vector<2x128xf32>
    %92 = arith.select %10, %86, %91 : vector<2x128xi1>, vector<2x128xf32>
    %93 = vector.extract_strided_slice %92 {offsets = [0, 0], sizes = [2, 32], strides = [1, 1]} : vector<2x128xf32> to vector<2x32xf32>
    %94 = vector.extract_strided_slice %92 {offsets = [0, 32], sizes = [2, 32], strides = [1, 1]} : vector<2x128xf32> to vector<2x32xf32>
    %95 = vector.extract_strided_slice %92 {offsets = [0, 64], sizes = [2, 32], strides = [1, 1]} : vector<2x128xf32> to vector<2x32xf32>
    %96 = vector.extract_strided_slice %92 {offsets = [0, 96], sizes = [2, 32], strides = [1, 1]} : vector<2x128xf32> to vector<2x32xf32>
    %97 = arith.mulf %94, %78 : vector<2x32xf32>
    %98 = arith.mulf %93, %95 : vector<2x32xf32>
    %99 = arith.addf %97, %98 : vector<2x32xf32>
    %100 = math.tanh %99 : vector<2x32xf32>
    %101 = arith.mulf %96, %100 : vector<2x32xf32>
    %cst_17 = arith.constant dense<0.000000e+00> : vector<2x128xf32>
    %102 = tpu.matmul %101, %1, %cst_17 {dimension_numbers = #tpu.dot_dimension_numbers<[1], [0], [0], [1], [0, 0, 1, 1], [], []>} : vector<2x32xf32>, vector<32x128xf32>, vector<2x128xf32> -> vector<2x128xf32>
    %103 = vector.broadcast %2 : vector<1x128xf32> to vector<2x128xf32>
    %104 = arith.addf %102, %103 : vector<2x128xf32>
    %105 = vector.extract_strided_slice %4 {offsets = [8, 0], sizes = [2, 128], strides = [1, 1]} : vector<16x128xf32> to vector<2x128xf32>
    %106 = arith.addf %104, %105 : vector<2x128xf32>
    %107 = math.tanh %106 : vector<2x128xf32>
    %108 = arith.negf %106 : vector<2x128xf32>
    %109 = math.exp %108 : vector<2x128xf32>
    %cst_18 = arith.constant 1.000000e+00 : f32
    %110 = vector.broadcast %cst_18 : f32 to vector<2x128xf32>
    %111 = arith.addf %110, %109 : vector<2x128xf32>
    %112 = arith.divf %110, %111 : vector<2x128xf32>
    %113 = arith.select %10, %107, %112 : vector<2x128xi1>, vector<2x128xf32>
    %114 = vector.extract_strided_slice %113 {offsets = [0, 0], sizes = [2, 32], strides = [1, 1]} : vector<2x128xf32> to vector<2x32xf32>
    %115 = vector.extract_strided_slice %113 {offsets = [0, 32], sizes = [2, 32], strides = [1, 1]} : vector<2x128xf32> to vector<2x32xf32>
    %116 = vector.extract_strided_slice %113 {offsets = [0, 64], sizes = [2, 32], strides = [1, 1]} : vector<2x128xf32> to vector<2x32xf32>
    %117 = vector.extract_strided_slice %113 {offsets = [0, 96], sizes = [2, 32], strides = [1, 1]} : vector<2x128xf32> to vector<2x32xf32>
    %118 = arith.mulf %115, %99 : vector<2x32xf32>
    %119 = arith.mulf %114, %116 : vector<2x32xf32>
    %120 = arith.addf %118, %119 : vector<2x32xf32>
    %121 = math.tanh %120 : vector<2x32xf32>
    %122 = arith.mulf %117, %121 : vector<2x32xf32>
    %cst_19 = arith.constant dense<0.000000e+00> : vector<2x128xf32>
    %123 = tpu.matmul %122, %1, %cst_19 {dimension_numbers = #tpu.dot_dimension_numbers<[1], [0], [0], [1], [0, 0, 1, 1], [], []>} : vector<2x32xf32>, vector<32x128xf32>, vector<2x128xf32> -> vector<2x128xf32>
    %124 = vector.broadcast %2 : vector<1x128xf32> to vector<2x128xf32>
    %125 = arith.addf %123, %124 : vector<2x128xf32>
    %126 = vector.extract_strided_slice %4 {offsets = [10, 0], sizes = [2, 128], strides = [1, 1]} : vector<16x128xf32> to vector<2x128xf32>
    %127 = arith.addf %125, %126 : vector<2x128xf32>
    %128 = math.tanh %127 : vector<2x128xf32>
    %129 = arith.negf %127 : vector<2x128xf32>
    %130 = math.exp %129 : vector<2x128xf32>
    %cst_20 = arith.constant 1.000000e+00 : f32
    %131 = vector.broadcast %cst_20 : f32 to vector<2x128xf32>
    %132 = arith.addf %131, %130 : vector<2x128xf32>
    %133 = arith.divf %131, %132 : vector<2x128xf32>
    %134 = arith.select %10, %128, %133 : vector<2x128xi1>, vector<2x128xf32>
    %135 = vector.extract_strided_slice %134 {offsets = [0, 0], sizes = [2, 32], strides = [1, 1]} : vector<2x128xf32> to vector<2x32xf32>
    %136 = vector.extract_strided_slice %134 {offsets = [0, 32], sizes = [2, 32], strides = [1, 1]} : vector<2x128xf32> to vector<2x32xf32>
    %137 = vector.extract_strided_slice %134 {offsets = [0, 64], sizes = [2, 32], strides = [1, 1]} : vector<2x128xf32> to vector<2x32xf32>
    %138 = vector.extract_strided_slice %134 {offsets = [0, 96], sizes = [2, 32], strides = [1, 1]} : vector<2x128xf32> to vector<2x32xf32>
    %139 = arith.mulf %136, %120 : vector<2x32xf32>
    %140 = arith.mulf %135, %137 : vector<2x32xf32>
    %141 = arith.addf %139, %140 : vector<2x32xf32>
    %142 = math.tanh %141 : vector<2x32xf32>
    %143 = arith.mulf %138, %142 : vector<2x32xf32>
    %cst_21 = arith.constant dense<0.000000e+00> : vector<2x128xf32>
    %144 = tpu.matmul %143, %1, %cst_21 {dimension_numbers = #tpu.dot_dimension_numbers<[1], [0], [0], [1], [0, 0, 1, 1], [], []>} : vector<2x32xf32>, vector<32x128xf32>, vector<2x128xf32> -> vector<2x128xf32>
    %145 = vector.broadcast %2 : vector<1x128xf32> to vector<2x128xf32>
    %146 = arith.addf %144, %145 : vector<2x128xf32>
    %147 = vector.extract_strided_slice %4 {offsets = [12, 0], sizes = [2, 128], strides = [1, 1]} : vector<16x128xf32> to vector<2x128xf32>
    %148 = arith.addf %146, %147 : vector<2x128xf32>
    %149 = math.tanh %148 : vector<2x128xf32>
    %150 = arith.negf %148 : vector<2x128xf32>
    %151 = math.exp %150 : vector<2x128xf32>
    %cst_22 = arith.constant 1.000000e+00 : f32
    %152 = vector.broadcast %cst_22 : f32 to vector<2x128xf32>
    %153 = arith.addf %152, %151 : vector<2x128xf32>
    %154 = arith.divf %152, %153 : vector<2x128xf32>
    %155 = arith.select %10, %149, %154 : vector<2x128xi1>, vector<2x128xf32>
    %156 = vector.extract_strided_slice %155 {offsets = [0, 0], sizes = [2, 32], strides = [1, 1]} : vector<2x128xf32> to vector<2x32xf32>
    %157 = vector.extract_strided_slice %155 {offsets = [0, 32], sizes = [2, 32], strides = [1, 1]} : vector<2x128xf32> to vector<2x32xf32>
    %158 = vector.extract_strided_slice %155 {offsets = [0, 64], sizes = [2, 32], strides = [1, 1]} : vector<2x128xf32> to vector<2x32xf32>
    %159 = vector.extract_strided_slice %155 {offsets = [0, 96], sizes = [2, 32], strides = [1, 1]} : vector<2x128xf32> to vector<2x32xf32>
    %160 = arith.mulf %157, %141 : vector<2x32xf32>
    %161 = arith.mulf %156, %158 : vector<2x32xf32>
    %162 = arith.addf %160, %161 : vector<2x32xf32>
    %163 = math.tanh %162 : vector<2x32xf32>
    %164 = arith.mulf %159, %163 : vector<2x32xf32>
    %cst_23 = arith.constant dense<0.000000e+00> : vector<2x128xf32>
    %165 = tpu.matmul %164, %1, %cst_23 {dimension_numbers = #tpu.dot_dimension_numbers<[1], [0], [0], [1], [0, 0, 1, 1], [], []>} : vector<2x32xf32>, vector<32x128xf32>, vector<2x128xf32> -> vector<2x128xf32>
    %166 = vector.broadcast %2 : vector<1x128xf32> to vector<2x128xf32>
    %167 = arith.addf %165, %166 : vector<2x128xf32>
    %168 = vector.extract_strided_slice %4 {offsets = [14, 0], sizes = [2, 128], strides = [1, 1]} : vector<16x128xf32> to vector<2x128xf32>
    %169 = arith.addf %167, %168 : vector<2x128xf32>
    %170 = math.tanh %169 : vector<2x128xf32>
    %171 = arith.negf %169 : vector<2x128xf32>
    %172 = math.exp %171 : vector<2x128xf32>
    %cst_24 = arith.constant 1.000000e+00 : f32
    %173 = vector.broadcast %cst_24 : f32 to vector<2x128xf32>
    %174 = arith.addf %173, %172 : vector<2x128xf32>
    %175 = arith.divf %173, %174 : vector<2x128xf32>
    %176 = arith.select %10, %170, %175 : vector<2x128xi1>, vector<2x128xf32>
    %177 = vector.extract_strided_slice %176 {offsets = [0, 0], sizes = [2, 32], strides = [1, 1]} : vector<2x128xf32> to vector<2x32xf32>
    %178 = vector.extract_strided_slice %176 {offsets = [0, 32], sizes = [2, 32], strides = [1, 1]} : vector<2x128xf32> to vector<2x32xf32>
    %179 = vector.extract_strided_slice %176 {offsets = [0, 64], sizes = [2, 32], strides = [1, 1]} : vector<2x128xf32> to vector<2x32xf32>
    %180 = vector.extract_strided_slice %176 {offsets = [0, 96], sizes = [2, 32], strides = [1, 1]} : vector<2x128xf32> to vector<2x32xf32>
    %181 = arith.mulf %178, %162 : vector<2x32xf32>
    %182 = arith.mulf %177, %179 : vector<2x32xf32>
    %183 = arith.addf %181, %182 : vector<2x32xf32>
    %184 = math.tanh %183 : vector<2x32xf32>
    %185 = arith.mulf %180, %184 : vector<2x32xf32>
    %cst_25 = arith.constant dense<0.000000e+00> : vector<2x128xf32>
    %186 = tpu.matmul %185, %1, %cst_25 {dimension_numbers = #tpu.dot_dimension_numbers<[1], [0], [0], [1], [0, 0, 1, 1], [], []>} : vector<2x32xf32>, vector<32x128xf32>, vector<2x128xf32> -> vector<2x128xf32>
    %187 = vector.broadcast %2 : vector<1x128xf32> to vector<2x128xf32>
    %188 = arith.addf %186, %187 : vector<2x128xf32>
    %189 = math.tanh %188 : vector<2x128xf32>
    %190 = arith.negf %188 : vector<2x128xf32>
    %191 = math.exp %190 : vector<2x128xf32>
    %cst_26 = arith.constant 1.000000e+00 : f32
    %192 = vector.broadcast %cst_26 : f32 to vector<2x128xf32>
    %193 = arith.addf %192, %191 : vector<2x128xf32>
    %194 = arith.divf %192, %193 : vector<2x128xf32>
    %195 = arith.select %10, %189, %194 : vector<2x128xi1>, vector<2x128xf32>
    %196 = vector.extract_strided_slice %195 {offsets = [0, 0], sizes = [2, 32], strides = [1, 1]} : vector<2x128xf32> to vector<2x32xf32>
    %197 = vector.extract_strided_slice %195 {offsets = [0, 32], sizes = [2, 32], strides = [1, 1]} : vector<2x128xf32> to vector<2x32xf32>
    %198 = vector.extract_strided_slice %195 {offsets = [0, 64], sizes = [2, 32], strides = [1, 1]} : vector<2x128xf32> to vector<2x32xf32>
    %199 = vector.extract_strided_slice %195 {offsets = [0, 96], sizes = [2, 32], strides = [1, 1]} : vector<2x128xf32> to vector<2x32xf32>
    %200 = arith.mulf %197, %183 : vector<2x32xf32>
    %201 = arith.mulf %196, %198 : vector<2x32xf32>
    %202 = arith.addf %200, %201 : vector<2x32xf32>
    %203 = math.tanh %202 : vector<2x32xf32>
    %204 = arith.mulf %199, %203 : vector<2x32xf32>
    %c0_27 = arith.constant 0 : index
    %c0_28 = arith.constant 0 : index
    %205 = vector.load %arg4[%c0_27, %c0_28] : memref<32x10xf32, #tpu.memory_space<vmem>>, vector<32x10xf32>
    %cst_29 = arith.constant dense<0.000000e+00> : vector<2x10xf32>
    %206 = tpu.matmul %204, %205, %cst_29 {dimension_numbers = #tpu.dot_dimension_numbers<[1], [0], [0], [1], [0, 0, 1, 1], [], []>} : vector<2x32xf32>, vector<32x10xf32>, vector<2x10xf32> -> vector<2x10xf32>
    %c0_30 = arith.constant 0 : index
    %c0_31 = arith.constant 0 : index
    %207 = vector.load %arg5[%c0_30, %c0_31] : memref<1x10xf32, #tpu.memory_space<vmem>>, vector<1x10xf32>
    %208 = vector.broadcast %207 : vector<1x10xf32> to vector<2x10xf32>
    %209 = arith.addf %206, %208 : vector<2x10xf32>
    %c0_32 = arith.constant 0 : index
    %c0_33 = arith.constant 0 : index
    %210 = vector.load %arg6[%c0_32, %c0_33] : memref<2x10xf32, #tpu.memory_space<vmem>>, vector<2x10xf32>
    tpu.vector_store %arg6[%c0_32, %c0_33], %209 {strides = array<i32>} : memref<2x10xf32, #tpu.memory_space<vmem>>, vector<2x10xf32>,
    return
  }
}

</mosaic_0001>

<bundles_post_ra>
// kernel: tpu_custom_call.1
= control target key start
LH: loop header
LB: loop body
LE: loop exit
PB: predicated region body
PF: predicated region fallthrough
CT: control target
= control target key end

     0   :  { %vm32_vm0 = vcmask 64512   ;;  %v1451_v2 = vmov 0.0   ;;  %s1730_s0 = inlined_call_operand.vmem [shape: f32[16,8], index: 0, kind: input, shape index: {}]   ;;  %s1731_s1 = inlined_call_operand.vmem [shape: f32[8,128], index: 1, kind: input, shape index: {}]   ;;  %s1732_s2 = inlined_call_operand.vmem [shape: f32[32,128], index: 2, kind: input, shape index: {}]   ;;  %s1733_s3 = inlined_call_operand.vmem [shape: f32[1,128], index: 3, kind: input, shape index: {}]   ;;  %s1734_s4 = inlined_call_operand.vmem [shape: f32[32,10], index: 4, kind: input, shape index: {}]   ;;  %s1735_s5 = inlined_call_operand.vmem [shape: f32[1,10], index: 5, kind: input, shape index: {}]   ;;  %s1736_s6 = inlined_call_operand.hbm [shape: f32[2,10], index: 6, kind: output, shape index: {}]  }
   0x1   :  { %v1495_v0 = vld [vmem:[%s1732_s2 + $0x18] sm:$0xff]  ;;  %v31_v1 = vld [vmem:[%s1731_s1] sm:$0xff]  ;;  %1241 = vmatprep.subr.mxu1 %v1451_v2  ;;  %v1504_v3 = vld [vmem:[%s1732_s2 + $0x10] sm:$0xff] }
   0x2   :  { %1236 = vmatprep.subr.mxu0 %v31_v1  ;;  %v24_v4 = vld [vmem:[%s1730_s0] sm:$0xff]  ;;  %v25_v5 = vld [vmem:[%s1730_s0 + $0x8] sm:$0xff]  ;;  %1242 = vmatpush3.msra.mxu1 %v1495_v0 }
   0x3   :  { %1237 = vmatpush3.msra.mxu0 %v31_v1 }
   0x4   :  { %11 = vsyncpa [#allocation3], 0  ;;  %1243 = vmatprep.subr.mxu1 %v1451_v2  ;;  %1238 = vmatprep.mubr.msk.f32.mxu0 %vm32_vm0, %v24_v4  ;;  %v1517_v6 = vld [vmem:[%s1732_s2 + $0x8] sm:$0xff]  ;;  %v1524_v7 = vld [vmem:[%s1732_s2] sm:$0xff]  ;;  %vm1452_vm1 = vmmov 0   ;;  %v114_v18 = vlaneseq  ;;  %s1454_s10 = smov 32  }
   0x5   :  { %1244 = vmatpush3.msra.mxu1 %v1504_v3  ;;  %1239 = vmatmul.mubr.msk.f32.vlgmr.msra.gmra.mxu0 %vm32_vm0, %v25_v5  ;;  %v1559_v9 = vld [vmem:[%s1733_s3] ss:$0 sm:$0xff]  ;;  %s1453_s3 = smov 64   ;;  %s1455_s11 = smov 96   ;;  %vm126_vm6 = vcmask 261120   ;;  %v1060_v20 = vld [vmem:[%s1734_s4 + $0x8] sm:$0xff] }
   0x6   :  { %1245 = vmatprep.subr.mxu1 %v1451_v2  ;;  %1249 = vmatprep.mubr.msk.f32.mxu1 %vm1452_vm1, %v1451_v2  ;;  %v115_v19 = vand.u32 127, %v114_v18  ;;  %s1456_s22 = smov [#allocation2]   ;;  %vm1145_vm7 = vcmask 74752  }
   0x7   :  { %1246 = vmatpush3.msra.mxu1 %v1517_v6  ;;  %1252 = vmatprep.subr.mxu0 %v1451_v2 }
   0x8   :  { %1247 = vmatprep.subr.mxu1 %v1451_v2  ;;  %1253 = vmatpush3.msra.mxu0 %v1495_v0  ;;  %vm116_vm2 = vcmp.ge.s32.totalorder %v115_v19, 64  ;;  %vm117_vm3 = vcmp.lt.s32.totalorder %v115_v19, 96  ;;  %vm119_vm5 = vcmp.lt.s32.totalorder %v115_v19, 16 }
   0x9   :  { %1248 = vmatpush3.msra.mxu1 %v1524_v7  ;;  %1254 = vmatprep.subr.mxu0 %v1451_v2  ;;  %vm1565_vm4 = vmand %vm116_vm2, %vm117_vm3 }
   0xa   :  { %1250 = vmatmul.mubr.f32.vlgmr.msra.gmra.mxu1 %v1451_v2  ;;  %1255 = vmatpush3.msra.mxu0 %v1504_v3 }
   0xb   :  { %1256 = vmatprep.subr.mxu0 %v1451_v2  ;;  %1260 = vmatprep.mubr.msk.f32.mxu0 %vm1452_vm1, %v1451_v2 }
   0xc   :  { %1257 = vmatpush3.msra.mxu0 %v1517_v6  ;;  %1263 = vmatprep.subr.mxu1 %v1451_v2 }
   0xd   :  { %1258 = vmatprep.subr.mxu0 %v1451_v2  ;;  %1264 = vmatpush3.msra.mxu1 %v1495_v0 }
   0xe   :  { %1259 = vmatpush3.msra.mxu0 %v1524_v7  ;;  %1265 = vmatprep.subr.mxu1 %v1451_v2 }
   0xf   :  { %1266 = vmatpush3.msra.mxu1 %v1504_v3  ;;  %1271 = vmatprep.mubr.msk.f32.mxu1 %vm1452_vm1, %v1451_v2 }
  0x10   :  { %1267 = vmatprep.subr.mxu1 %v1451_v2  ;;  %1274 = vmatprep.subr.mxu0 %v1451_v2 }
  0x11   :  { %1268 = vmatpush3.msra.mxu1 %v1517_v6 }
  0x12   :  { %1269 = vmatprep.subr.mxu1 %v1451_v2 }
  0x13   :  { %1270 = vmatpush3.msra.mxu1 %v1524_v7 }
  0x14   :  { %1285 = vmatprep.subr.mxu1 %v1451_v2 }
  0xc5   :  { %v1554_v8 = vpop.f32.mrf.mxu0 }
  0xc7   :  { %v1562_v12 = vpop.f32.mrf.mxu0 }
  0xc8   :  { %v310_v38 = vrot.slane %v1562_v12, 2  ;;  %v417_v59 = vrot.slane %v1562_v12, 4 }
  0xca   :  { %v196_v10 = vpop.f32.mrf.mxu1 }
  0xcb   :  { %v197_v11 = vadd.f32 %v1559_v9, %v196_v10 }
  0xcc   :  { %v1251_v13 = vpop.f32.mrf.mxu1 }
  0xcd   :  { %v200_v14 = vadd.f32 %v197_v11, %v1562_v12 }
  0xcf   :  { %v1164_v15 = vmul.f32 -1.442695, %v200_v14 }
  0xd1   :  { %1357 = vpow2.f32 %v1164_v15 }
  0xd2   :  { %1359 = vtanh.f32 %v200_v14 }
  0xde   :  { %v1358_v16 = vpop.eup %1357 }
  0xdf   :  { %v205_v17 = vadd.f32 1.0, %v1358_v16  ;;  %v1360_v21 = vpop.eup %1359 }
  0xe1   :  { %1361 = vrcp.f32 %v205_v17 }
  0xee   :  { %v1362_v22 = vpop.eup %1361 }
  0xef   :  { %v208_v23 = vsel %vm1565_vm4, %v1360_v21, %v1362_v22 }
  0xf0   :  { %211 = vrot.lane.b32.xlu0 %v208_v23, %s1453_s3  ;;  %v209_v26 = vmul.f32 0.0, %v208_v23 }
 0x162   :  { %v212_v24 = vpop.permute.xlu0 %211 }
 0x163   :  { %v214_v25 = vmul.f32 %v212_v24, %v208_v23  ;;  %v520_v24 = vrot.slane %v1562_v12, 6 }
 0x165   :  { %216 = vrot.lane.b32.xlu0 %v214_v25, %s1454_s10 }
 0x1d7   :  { %v217_v27 = vpop.permute.xlu0 %216 }
 0x1d8   :  { %v219_v28 = vadd.f32 %v217_v27, %v209_v26 }
 0x1da   :  { %1363 = vtanh.f32 %v219_v28  ;;  %227 = vrot.lane.b32.xlu0 %v219_v28, %s1455_s11 }
 0x1e7   :  { %v1364_v29 = vpop.eup %1363 }
 0x1e8   :  { %222 = vrot.lane.b32.xlu1 %v1364_v29, %s1453_s3 }
 0x24c   :  { %v228_v30 = vpop.permute.xlu0 %227 }
 0x24d   :  { %v230_v31 = vsel %vm119_vm5, %v228_v30, 0.0 }
 0x24e   :  { %322 = vrot.lane.b32.xlu0 %v230_v31, %s1454_s10 }
 0x25a   :  { %v223_v32 = vpop.permute.xlu1 %222 }
 0x25b   :  { %v225_v33 = vmul.f32 %v223_v32, %v208_v23 }
 0x25d   :  { %232 = vrot.lane.b32.xlu1 %v225_v33, %s1454_s10 }
 0x2c0   :  { %v323_v49 = vpop.permute.xlu0 %322 }
 0x2cf   :  { %v233_v34 = vpop.permute.xlu1 %232 }
 0x2d0   :  { %v235_v35 = vsel %vm119_vm5, %v233_v34, 0.0 }
 0x2d1   :  { %1261 = vmatmul.mubr.msk.f32.vlgmr.msra.gmra.mxu0 %vm126_vm6, %v235_v35 }
 0x2d2   :  { %1275 = vmatpush3.msra.mxu0 %v1495_v0  ;;  %1282 = vmatprep.mubr.msk.f32.mxu0 %vm1452_vm1, %v1451_v2 }
 0x2d3   :  { %1276 = vmatprep.subr.mxu0 %v1451_v2 }
 0x2d4   :  { %1277 = vmatpush3.msra.mxu0 %v1504_v3 }
 0x2d5   :  { %1278 = vmatprep.subr.mxu0 %v1451_v2 }
 0x2d6   :  { %1279 = vmatpush3.msra.mxu0 %v1517_v6 }
 0x2d7   :  { %1280 = vmatprep.subr.mxu0 %v1451_v2 }
 0x2d8   :  { %1281 = vmatpush3.msra.mxu0 %v1524_v7 }
 0x2d9   :  { %1296 = vmatprep.subr.mxu0 %v1451_v2 }
 0x391   :  { %v305_v36 = vpop.f32.mrf.mxu0 }
 0x392   :  { %v306_v37 = vadd.f32 %v1559_v9, %v305_v36 }
 0x393   :  { %v1262_v39 = vpop.f32.mrf.mxu0 }
 0x394   :  { %v312_v40 = vadd.f32 %v310_v38, %v306_v37 }
 0x396   :  { %v1166_v41 = vmul.f32 -1.442695, %v312_v40 }
 0x398   :  { %1365 = vpow2.f32 %v1166_v41 }
 0x399   :  { %1367 = vtanh.f32 %v312_v40 }
 0x3a5   :  { %v1366_v42 = vpop.eup %1365 }
 0x3a6   :  { %v317_v43 = vadd.f32 1.0, %v1366_v42  ;;  %v1368_v44 = vpop.eup %1367 }
 0x3a8   :  { %1369 = vrcp.f32 %v317_v43 }
 0x3b5   :  { %v1370_v45 = vpop.eup %1369 }
 0x3b6   :  { %v320_v46 = vsel %vm1565_vm4, %v1368_v44, %v1370_v45 }
 0x3b7   :  { %327 = vrot.lane.b32.xlu1 %v320_v46, %s1453_s3  ;;  %v325_v50 = vmul.f32 %v323_v49, %v320_v46 }
 0x429   :  { %v328_v47 = vpop.permute.xlu1 %327 }
 0x42a   :  { %v330_v48 = vmul.f32 %v328_v47, %v320_v46 }
 0x42c   :  { %332 = vrot.lane.b32.xlu1 %v330_v48, %s1454_s10 }
 0x49e   :  { %v333_v51 = vpop.permute.xlu1 %332 }
 0x49f   :  { %v335_v52 = vadd.f32 %v333_v51, %v325_v50 }
 0x4a1   :  { %1371 = vtanh.f32 %v335_v52 }
 0x4ae   :  { %v1372_v53 = vpop.eup %1371 }
 0x4af   :  { %338 = vrot.lane.b32.xlu0 %v1372_v53, %s1453_s3 }
 0x521   :  { %v339_v54 = vpop.permute.xlu0 %338 }
 0x522   :  { %v341_v55 = vmul.f32 %v339_v54, %v320_v46 }
 0x524   :  { %343 = vrot.lane.b32.xlu1 %v341_v55, %s1454_s10 }
 0x596   :  { %v344_v56 = vpop.permute.xlu1 %343 }
 0x597   :  { %1272 = vmatmul.mubr.msk.f32.vlgmr.msra.gmra.mxu1 %vm126_vm6, %v344_v56 }
 0x598   :  { %1286 = vmatpush3.msra.mxu1 %v1495_v0  ;;  %1293 = vmatprep.mubr.msk.f32.mxu1 %vm1452_vm1, %v1451_v2 }
 0x599   :  { %1287 = vmatprep.subr.mxu1 %v1451_v2 }
 0x59a   :  { %1288 = vmatpush3.msra.mxu1 %v1504_v3 }
 0x59b   :  { %1289 = vmatprep.subr.mxu1 %v1451_v2 }
 0x59c   :  { %1290 = vmatpush3.msra.mxu1 %v1517_v6 }
 0x59d   :  { %1291 = vmatprep.subr.mxu1 %v1451_v2 }
 0x59e   :  { %1292 = vmatpush3.msra.mxu1 %v1524_v7 }
 0x59f   :  { %1307 = vmatprep.subr.mxu1 %v1451_v2 }
 0x657   :  { %v413_v57 = vpop.f32.mrf.mxu1 }
 0x658   :  { %v414_v58 = vadd.f32 %v1559_v9, %v413_v57 }
 0x659   :  { %v1273_v60 = vpop.f32.mrf.mxu1 }
 0x65a   :  { %v419_v61 = vadd.f32 %v417_v59, %v414_v58 }
 0x65c   :  { %v1168_v62 = vmul.f32 -1.442695, %v419_v61 }
 0x65e   :  { %1373 = vpow2.f32 %v1168_v62  ;;  %v725_v62 = vrot.slane %v1554_v8, 2 }
 0x65f   :  { %1375 = vtanh.f32 %v419_v61 }
 0x66b   :  { %v1374_v63 = vpop.eup %1373 }
 0x66c   :  { %v424_v1 = vadd.f32 1.0, %v1374_v63  ;;  %v1376_v4 = vpop.eup %1375 }
 0x66e   :  { %1377 = vrcp.f32 %v424_v1 }
 0x67b   :  { %v1378_v5 = vpop.eup %1377 }
 0x67c   :  { %v427_v10 = vsel %vm1565_vm4, %v1376_v4, %v1378_v5 }
 0x67d   :  { %430 = vrot.lane.b32.xlu0 %v427_v10, %s1453_s3  ;;  %v428_v14 = vmul.f32 %v427_v10, %v335_v52 }
 0x6ef   :  { %v431_v11 = vpop.permute.xlu0 %430 }
 0x6f0   :  { %v433_v13 = vmul.f32 %v431_v11, %v427_v10 }
 0x6f2   :  { %435 = vrot.lane.b32.xlu1 %v433_v13, %s1454_s10 }
 0x764   :  { %v436_v15 = vpop.permute.xlu1 %435 }
 0x765   :  { %v438_v16 = vadd.f32 %v436_v15, %v428_v14 }
 0x767   :  { %1379 = vtanh.f32 %v438_v16 }
 0x774   :  { %v1380_v17 = vpop.eup %1379 }
 0x775   :  { %441 = vrot.lane.b32.xlu0 %v1380_v17, %s1453_s3 }
 0x7e7   :  { %v442_v18 = vpop.permute.xlu0 %441 }
 0x7e8   :  { %v444_v19 = vmul.f32 %v442_v18, %v427_v10 }
 0x7ea   :  { %446 = vrot.lane.b32.xlu1 %v444_v19, %s1454_s10 }
 0x85c   :  { %v447_v21 = vpop.permute.xlu1 %446 }
 0x85d   :  { %1283 = vmatmul.mubr.msk.f32.vlgmr.msra.gmra.mxu0 %vm126_vm6, %v447_v21 }
 0x85e   :  { %1297 = vmatpush3.msra.mxu0 %v1495_v0  ;;  %1304 = vmatprep.mubr.msk.f32.mxu0 %vm1452_vm1, %v1451_v2 }
 0x85f   :  { %1298 = vmatprep.subr.mxu0 %v1451_v2 }
 0x860   :  { %1299 = vmatpush3.msra.mxu0 %v1504_v3 }
 0x861   :  { %1300 = vmatprep.subr.mxu0 %v1451_v2 }
 0x862   :  { %1301 = vmatpush3.msra.mxu0 %v1517_v6 }
 0x863   :  { %1302 = vmatprep.subr.mxu0 %v1451_v2 }
 0x864   :  { %1303 = vmatpush3.msra.mxu0 %v1524_v7 }
 0x865   :  { %1318 = vmatprep.subr.mxu0 %v1451_v2 }
 0x91d   :  { %v516_v22 = vpop.f32.mrf.mxu0 }
 0x91e   :  { %v517_v23 = vadd.f32 %v1559_v9, %v516_v22 }
 0x91f   :  { %v1284_v25 = vpop.f32.mrf.mxu0 }
 0x920   :  { %v522_v26 = vadd.f32 %v520_v24, %v517_v23 }
 0x922   :  { %v1170_v27 = vmul.f32 -1.442695, %v522_v26 }
 0x924   :  { %1381 = vpow2.f32 %v1170_v27 }
 0x925   :  { %1383 = vtanh.f32 %v522_v26 }
 0x931   :  { %v1382_v28 = vpop.eup %1381 }
 0x932   :  { %v527_v29 = vadd.f32 1.0, %v1382_v28  ;;  %v1384_v30 = vpop.eup %1383 }
 0x934   :  { %1385 = vrcp.f32 %v527_v29 }
 0x941   :  { %v1386_v31 = vpop.eup %1385 }
 0x942   :  { %v530_v32 = vsel %vm1565_vm4, %v1384_v30, %v1386_v31 }
 0x943   :  { %533 = vrot.lane.b32.xlu0 %v530_v32, %s1453_s3  ;;  %v531_v12 = vmul.f32 %v530_v32, %v438_v16 }
 0x9b5   :  { %v534_v33 = vpop.permute.xlu0 %533 }
 0x9b6   :  { %v536_v34 = vmul.f32 %v534_v33, %v530_v32 }
 0x9b8   :  { %538 = vrot.lane.b32.xlu1 %v536_v34, %s1454_s10 }
 0xa2a   :  { %v539_v35 = vpop.permute.xlu1 %538 }
 0xa2b   :  { %v541_v36 = vadd.f32 %v539_v35, %v531_v12 }
 0xa2d   :  { %1387 = vtanh.f32 %v541_v36 }
 0xa3a   :  { %v1388_v37 = vpop.eup %1387 }
 0xa3b   :  { %544 = vrot.lane.b32.xlu0 %v1388_v37, %s1453_s3 }
 0xaad   :  { %v545_v38 = vpop.permute.xlu0 %544 }
 0xaae   :  { %v547_v39 = vmul.f32 %v545_v38, %v530_v32 }
 0xab0   :  { %549 = vrot.lane.b32.xlu1 %v547_v39, %s1454_s10 }
 0xb22   :  { %v550_v40 = vpop.permute.xlu1 %549 }
 0xb23   :  { %1294 = vmatmul.mubr.msk.f32.vlgmr.msra.gmra.mxu1 %vm126_vm6, %v550_v40 }
 0xb24   :  { %1308 = vmatpush3.msra.mxu1 %v1495_v0  ;;  %1315 = vmatprep.mubr.msk.f32.mxu1 %vm1452_vm1, %v1451_v2 }
 0xb25   :  { %1309 = vmatprep.subr.mxu1 %v1451_v2 }
 0xb26   :  { %1310 = vmatpush3.msra.mxu1 %v1504_v3 }
 0xb27   :  { %1311 = vmatprep.subr.mxu1 %v1451_v2 }
 0xb28   :  { %1312 = vmatpush3.msra.mxu1 %v1517_v6 }
 0xb29   :  { %1313 = vmatprep.subr.mxu1 %v1451_v2 }
 0xb2a   :  { %1314 = vmatpush3.msra.mxu1 %v1524_v7 }
 0xb2b   :  { %1329 = vmatprep.subr.mxu1 %v1451_v2 }
 0xbe3   :  { %v619_v41 = vpop.f32.mrf.mxu1 }
 0xbe4   :  { %v620_v42 = vadd.f32 %v1559_v9, %v619_v41 }
 0xbe5   :  { %v1295_v43 = vpop.f32.mrf.mxu1 }
 0xbe6   :  { %v623_v44 = vadd.f32 %v1554_v8, %v620_v42  ;;  %v931_v42 = vrot.slane %v1554_v8, 6 }
 0xbe8   :  { %v1172_v45 = vmul.f32 -1.442695, %v623_v44 }
 0xbea   :  { %1389 = vpow2.f32 %v1172_v45 }
 0xbeb   :  { %1391 = vtanh.f32 %v623_v44 }
 0xbf7   :  { %v1390_v46 = vpop.eup %1389 }
 0xbf8   :  { %v628_v47 = vadd.f32 1.0, %v1390_v46  ;;  %v1392_v48 = vpop.eup %1391 }
 0xbfa   :  { %1393 = vrcp.f32 %v628_v47 }
 0xc07   :  { %v1394_v49 = vpop.eup %1393 }
 0xc08   :  { %v631_v50 = vsel %vm1565_vm4, %v1392_v48, %v1394_v49 }
 0xc09   :  { %634 = vrot.lane.b32.xlu0 %v631_v50, %s1453_s3  ;;  %v632_v53 = vmul.f32 %v631_v50, %v541_v36 }
 0xc7b   :  { %v635_v51 = vpop.permute.xlu0 %634 }
 0xc7c   :  { %v637_v52 = vmul.f32 %v635_v51, %v631_v50 }
 0xc7e   :  { %639 = vrot.lane.b32.xlu1 %v637_v52, %s1454_s10 }
 0xcf0   :  { %v640_v54 = vpop.permute.xlu1 %639 }
 0xcf1   :  { %v642_v55 = vadd.f32 %v640_v54, %v632_v53 }
 0xcf3   :  { %1395 = vtanh.f32 %v642_v55 }
 0xd00   :  { %v1396_v56 = vpop.eup %1395 }
 0xd01   :  { %645 = vrot.lane.b32.xlu0 %v1396_v56, %s1453_s3 }
 0xd73   :  { %v646_v57 = vpop.permute.xlu0 %645 }
 0xd74   :  { %v648_v58 = vmul.f32 %v646_v57, %v631_v50 }
 0xd76   :  { %650 = vrot.lane.b32.xlu1 %v648_v58, %s1454_s10 }
 0xde8   :  { %v651_v59 = vpop.permute.xlu1 %650 }
 0xde9   :  { %1305 = vmatmul.mubr.msk.f32.vlgmr.msra.gmra.mxu0 %vm126_vm6, %v651_v59 }
 0xdea   :  { %1319 = vmatpush3.msra.mxu0 %v1495_v0  ;;  %1326 = vmatprep.mubr.msk.f32.mxu0 %vm1452_vm1, %v1451_v2 }
 0xdeb   :  { %1320 = vmatprep.subr.mxu0 %v1451_v2 }
 0xdec   :  { %1321 = vmatpush3.msra.mxu0 %v1504_v3 }
 0xded   :  { %1322 = vmatprep.subr.mxu0 %v1451_v2 }
 0xdee   :  { %1323 = vmatpush3.msra.mxu0 %v1517_v6 }
 0xdef   :  { %1324 = vmatprep.subr.mxu0 %v1451_v2 }
 0xdf0   :  { %1325 = vmatpush3.msra.mxu0 %v1524_v7 }
 0xdf1   :  { %1340 = vmatprep.subr.mxu0 %v1451_v2 }
 0xea9   :  { %v720_v60 = vpop.f32.mrf.mxu0 }
 0xeaa   :  { %v721_v61 = vadd.f32 %v1559_v9, %v720_v60 }
 0xeab   :  { %v1306_v63 = vpop.f32.mrf.mxu0 }
 0xeac   :  { %v727_v1 = vadd.f32 %v725_v62, %v721_v61 }
 0xeae   :  { %v1174_v4 = vmul.f32 -1.442695, %v727_v1 }
 0xeb0   :  { %1397 = vpow2.f32 %v1174_v4 }
 0xeb1   :  { %1399 = vtanh.f32 %v727_v1 }
 0xebd   :  { %v1398_v5 = vpop.eup %1397 }
 0xebe   :  { %v732_v10 = vadd.f32 1.0, %v1398_v5  ;;  %v1400_v11 = vpop.eup %1399 }
 0xec0   :  { %1401 = vrcp.f32 %v732_v10 }
 0xecd   :  { %v1402_v13 = vpop.eup %1401 }
 0xece   :  { %v735_v14 = vsel %vm1565_vm4, %v1400_v11, %v1402_v13 }
 0xecf   :  { %738 = vrot.lane.b32.xlu0 %v735_v14, %s1453_s3  ;;  %v736_v17 = vmul.f32 %v735_v14, %v642_v55 }
 0xf41   :  { %v739_v15 = vpop.permute.xlu0 %738 }
 0xf42   :  { %v741_v16 = vmul.f32 %v739_v15, %v735_v14 }
 0xf44   :  { %743 = vrot.lane.b32.xlu1 %v741_v16, %s1454_s10  ;;  %v1062_v16 = vld [vmem:[%s1734_s4 + $0x18] sm:$0xff] }
 0xfb6   :  { %v744_v18 = vpop.permute.xlu1 %743 }
 0xfb7   :  { %v746_v19 = vadd.f32 %v744_v18, %v736_v17  ;;  %v1061_v17 = vld [vmem:[%s1734_s4 + $0x10] sm:$0xff]  ;;  %v1059_v18 = vld [vmem:[%s1734_s4] sm:$0xff]  ;;  %s1153_s4 = sshll.u32 %s1456_s22, 4  ;;  %s1154_s4 = int_to_ptr.vmem [resolvable:$true] %s1153_s4 }
 0xfb8   :  { %s1429_s23 = scalar_lea.vmem %s1154_s4, 32  ;;  %p1434_p1 = scmp.lt.s32.totalorder %s1154_s4, %s1154_s4 }
 0xfb9   :  { %1403 = vtanh.f32 %v746_v19  ;;  %p1430_p0 = scmp.ne.s32.totalorder %s1154_s4, %s1429_s23  ;;  %p1435_p2 = scmp.lt.s32.totalorder %s1429_s23, %s1429_s23 }
 0xfbb   :  { %p1436_p3 = por %p1435_p2, %p1434_p1 }
 0xfbd   :  { %p1437_p4 = pnand %p1436_p3, %p1430_p0 }
 0xfc6   :  { %v1404_v21 = vpop.eup %1403 }
 0xfc7   :  { %749 = vrot.lane.b32.xlu0 %v1404_v21, %s1453_s3 }
0x1039   :  { %v750_v22 = vpop.permute.xlu0 %749 }
0x103a   :  { %v752_v23 = vmul.f32 %v750_v22, %v735_v14 }
0x103c   :  { %754 = vrot.lane.b32.xlu1 %v752_v23, %s1454_s10 }
0x10ae   :  { %v755_v24 = vpop.permute.xlu1 %754 }
0x10af   :  { %1316 = vmatmul.mubr.msk.f32.vlgmr.msra.gmra.mxu1 %vm126_vm6, %v755_v24  ;;  %v1181_v24 = vld [vmem:[%s1735_s5] ss:$0 sm:$0xff] }
0x10b0   :  { %1330 = vmatpush3.msra.mxu1 %v1495_v0  ;;  %1337 = vmatprep.mubr.msk.f32.mxu1 %vm1452_vm1, %v1451_v2  ;;  %v828_v0 = vrot.slane %v1554_v8, 4 }
0x10b1   :  { %1331 = vmatprep.subr.mxu1 %v1451_v2 }
0x10b2   :  { %1332 = vmatpush3.msra.mxu1 %v1504_v3 }
0x10b3   :  { %1333 = vmatprep.subr.mxu1 %v1451_v2 }
0x10b4   :  { %1334 = vmatpush3.msra.mxu1 %v1517_v6 }
0x10b5   :  { %1335 = vmatprep.subr.mxu1 %v1451_v2 }
0x10b6   :  { %1336 = vmatpush3.msra.mxu1 %v1524_v7 }
0x116f   :  { %v824_v25 = vpop.f32.mrf.mxu1 }
0x1170   :  { %v825_v26 = vadd.f32 %v1559_v9, %v824_v25 }
0x1171   :  { %v1317_v27 = vpop.f32.mrf.mxu1 }
0x1172   :  { %v830_v28 = vadd.f32 %v828_v0, %v825_v26 }
0x1174   :  { %v1176_v29 = vmul.f32 -1.442695, %v830_v28 }
0x1176   :  { %1405 = vpow2.f32 %v1176_v29 }
0x1177   :  { %1407 = vtanh.f32 %v830_v28 }
0x1183   :  { %v1406_v30 = vpop.eup %1405 }
0x1184   :  { %v835_v31 = vadd.f32 1.0, %v1406_v30  ;;  %v1408_v3 = vpop.eup %1407 }
0x1186   :  { %1409 = vrcp.f32 %v835_v31 }
0x1193   :  { %v1410_v32 = vpop.eup %1409 }
0x1194   :  { %v838_v6 = vsel %vm1565_vm4, %v1408_v3, %v1410_v32 }
0x1195   :  { %841 = vrot.lane.b32.xlu0 %v838_v6, %s1453_s3  ;;  %v839_v34 = vmul.f32 %v838_v6, %v746_v19 }
0x1207   :  { %v842_v7 = vpop.permute.xlu0 %841 }
0x1208   :  { %v844_v33 = vmul.f32 %v842_v7, %v838_v6 }
0x120a   :  { %846 = vrot.lane.b32.xlu1 %v844_v33, %s1454_s10 }
0x127c   :  { %v847_v12 = vpop.permute.xlu1 %846 }
0x127d   :  { %v849_v35 = vadd.f32 %v847_v12, %v839_v34 }
0x127f   :  { %1411 = vtanh.f32 %v849_v35 }
0x128c   :  { %v1412_v36 = vpop.eup %1411 }
0x128d   :  { %852 = vrot.lane.b32.xlu0 %v1412_v36, %s1453_s3 }
0x12ff   :  { %v853_v37 = vpop.permute.xlu0 %852 }
0x1300   :  { %v855_v38 = vmul.f32 %v853_v37, %v838_v6 }
0x1302   :  { %857 = vrot.lane.b32.xlu1 %v855_v38, %s1454_s10 }
0x1374   :  { %v858_v39 = vpop.permute.xlu1 %857 }
0x1375   :  { %1327 = vmatmul.mubr.msk.f32.vlgmr.msra.gmra.mxu0 %vm126_vm6, %v858_v39 }
0x1376   :  { %1348 = vmatprep.mubr.msk.f32.mxu0 %vm1452_vm1, %v1451_v2  ;;  %1341 = vmatpush3.msra.mxu0 %v1062_v16 }
0x1377   :  { %1342 = vmatprep.subr.mxu0 %v1451_v2 }
0x1378   :  { %1343 = vmatpush3.msra.mxu0 %v1061_v17 }
0x1379   :  { %1344 = vmatprep.subr.mxu0 %v1451_v2 }
0x137a   :  { %1345 = vmatpush3.msra.mxu0 %v1060_v20 }
0x137b   :  { %1346 = vmatprep.subr.mxu0 %v1451_v2 }
0x137c   :  { %1347 = vmatpush3.msra.mxu0 %v1059_v18 }
0x1435   :  { %v927_v40 = vpop.f32.mrf.mxu0 }
0x1436   :  { %v928_v41 = vadd.f32 %v1559_v9, %v927_v40 }
0x1437   :  { %v1328_v43 = vpop.f32.mrf.mxu0 }
0x1438   :  { %v933_v44 = vadd.f32 %v931_v42, %v928_v41 }
0x143a   :  { %v1178_v45 = vmul.f32 -1.442695, %v933_v44 }
0x143c   :  { %1413 = vpow2.f32 %v1178_v45 }
0x143d   :  { %1415 = vtanh.f32 %v933_v44 }
0x1449   :  { %v1414_v46 = vpop.eup %1413 }
0x144a   :  { %v938_v47 = vadd.f32 1.0, %v1414_v46  ;;  %v1416_v48 = vpop.eup %1415 }
0x144c   :  { %1417 = vrcp.f32 %v938_v47 }
0x1459   :  { %v1418_v49 = vpop.eup %1417 }
0x145a   :  { %v941_v50 = vsel %vm1565_vm4, %v1416_v48, %v1418_v49 }
0x145b   :  { %944 = vrot.lane.b32.xlu0 %v941_v50, %s1453_s3  ;;  %v942_v8 = vmul.f32 %v941_v50, %v849_v35 }
0x14cd   :  { %v945_v51 = vpop.permute.xlu0 %944 }
0x14ce   :  { %v947_v52 = vmul.f32 %v945_v51, %v941_v50 }
0x14d0   :  { %949 = vrot.lane.b32.xlu1 %v947_v52, %s1454_s10 }
0x1542   :  { %v950_v53 = vpop.permute.xlu1 %949 }
0x1543   :  { %v952_v54 = vadd.f32 %v950_v53, %v942_v8 }
0x1545   :  { %1419 = vtanh.f32 %v952_v54 }
0x1552   :  { %v1420_v55 = vpop.eup %1419 }
0x1553   :  { %955 = vrot.lane.b32.xlu0 %v1420_v55, %s1453_s3 }
0x15c5   :  { %v956_v56 = vpop.permute.xlu0 %955 }
0x15c6   :  { %v958_v57 = vmul.f32 %v956_v56, %v941_v50 }
0x15c8   :  { %960 = vrot.lane.b32.xlu1 %v958_v57, %s1454_s10 }
0x163a   :  { %v961_v58 = vpop.permute.xlu1 %960 }
0x163b   :  { %1338 = vmatmul.mubr.msk.f32.vlgmr.msra.gmra.mxu1 %vm126_vm6, %v961_v58 }
0x16fb   :  { %v1030_v59 = vpop.f32.mrf.mxu1 }
0x16fc   :  { %v1031_v60 = vadd.f32 %v1559_v9, %v1030_v59 }
0x16fd   :  { %v1339_v61 = vpop.f32.mrf.mxu1 }
0x16fe   :  { %v1180_v62 = vmul.f32 -1.442695, %v1031_v60 }
0x1700   :  { %1421 = vpow2.f32 %v1180_v62 }
0x1701   :  { %1423 = vtanh.f32 %v1031_v60 }
0x170d   :  { %v1422_v63 = vpop.eup %1421 }
0x170e   :  { %v1038_v1 = vadd.f32 1.0, %v1422_v63  ;;  %v1424_v4 = vpop.eup %1423 }
0x1710   :  { %1425 = vrcp.f32 %v1038_v1 }
0x171d   :  { %v1426_v5 = vpop.eup %1425 }
0x171e   :  { %v1041_v10 = vsel %vm1565_vm4, %v1424_v4, %v1426_v5 }
0x171f   :  { %1044 = vrot.lane.b32.xlu0 %v1041_v10, %s1453_s3  ;;  %v1042_v14 = vmul.f32 %v1041_v10, %v952_v54 }
0x1791   :  { %v1045_v11 = vpop.permute.xlu0 %1044 }
0x1792   :  { %v1047_v13 = vmul.f32 %v1045_v11, %v1041_v10 }
0x1794   :  { %1049 = vrot.lane.b32.xlu1 %v1047_v13, %s1454_s10 }
0x1806   :  { %v1050_v9 = vpop.permute.xlu1 %1049 }
0x1807   :  { %v1052_v15 = vadd.f32 %v1050_v9, %v1042_v14 }
0x1809   :  { %1427 = vtanh.f32 %v1052_v15 }
0x1816   :  { %v1428_v19 = vpop.eup %1427 }
0x1817   :  { %1055 = vrot.lane.b32.xlu0 %v1428_v19, %s1453_s3 }
0x1889   :  { %v1056_v21 = vpop.permute.xlu0 %1055 }
0x188a   :  { %v1058_v22 = vmul.f32 %v1056_v21, %v1041_v10 }
0x188c   :  { %1071 = vrot.lane.b32.xlu1 %v1058_v22, %s1454_s10 }
0x18fe   :  { %v1072_v23 = vpop.permute.xlu1 %1071 }
0x18ff   :  { %1349 = vmatmul.mubr.msk.f32.vlgmr.msra.gmra.mxu0 %vm126_vm6, %v1072_v23 }
0x19bf   :  { %v1141_v25 = vpop.f32.mrf.mxu0 }
0x19c0   :  { %v1142_v2 = vadd.f32 %v1181_v24, %v1141_v25 }
0x19c1   :  { %v1350_v26 = vpop.f32.mrf.mxu0 }
0x19c2   :  { %1146 = vst.msk [vmem:[#allocation2] sm:$0x3] %vm1145_vm7, %v1142_v2 }
0x19c3   :  { %1440 = shalt.err (!%p1437_p4)
}
0x19c4   :  { %1156 = dma.vmem_to_hbm [thread:$0]  %s1154_s4, 32, %s1736_s6, [#allocation3]  }
0x19c5   :  { %1449 = dma.done.wait [#allocation3], 32  }
0x19c6   :  { %1450 = vsyncadd [#allocation3], 4294967264 }
0x19c7   :  { %1160 = vsyncpa [#allocation3], 1 }

</bundles_post_ra>
